<compile_context>
chip_gen: v6e
topology: v6e:2x2x1
jax: 0.10.0
libtpu: 0.0.40
codegen_flags: <defaults>
</compile_context>

<pallas_src>
import functools

import jax
import jax.numpy as jnp
from jax.experimental import pallas as pl
from jax.experimental.pallas import tpu as pltpu


def _chan_norm_kernel(x_ref, g_ref, b_ref, o_ref, *, eps):
    # Works for both layouts: the channel axis is always axis=1 of the block and g/b
    # broadcast over the remaining (spatial) axes. Matches torch: unbiased=False variance,
    # eps added to var before sqrt.
    x = x_ref[...].astype(jnp.float32)
    mean = jnp.mean(x, axis=1, keepdims=True)
    centered = x - mean
    var = jnp.mean(centered * centered, axis=1, keepdims=True)   # population variance
    inv = jax.lax.rsqrt(var + eps)
    g = g_ref[...].astype(jnp.float32)
    b = b_ref[...].astype(jnp.float32)
    o_ref[...] = (centered * inv * g + b).astype(o_ref.dtype)
    # TODO(synk): single-pass sum / sum-of-squares variant only if xprof ever shows compute
    # exposed after the tile enlargement (it is hidden under DMA today).


def _round_up(a, m):
    return -(-a // m) * m


def _vmem_capacity_bytes():
    """Per-TensorCore physical VMEM; falls back to the smallest (v7x) value if unknown."""
    try:
        info = pltpu.get_tpu_info()
        cap = getattr(info, "vmem_capacity_bytes", None)
        if cap:
            return int(cap)
    except Exception:
        pass
    return 64 * 1024 * 1024


def _budgets():
    """(input-block byte budget, scoped-VMEM limit, min total grid blocks) per generation."""
    cap = _vmem_capacity_bytes()
    if cap >= 96 * 1024 * 1024:
        # v5e / v6e: 128 MiB physical VMEM, single TensorCore per chip.
        return 4 * 1024 * 1024, 64 * 1024 * 1024, 1
    # v7x: 64 MiB per TC, 2 TCs per chip -> smaller blocks, >= 2 pipelined blocks per TC.
    return int(2.5 * 1024 * 1024), 48 * 1024 * 1024, 4


def _pick_tile_hw_3d(hw, c, dtype, block_budget, vmem_limit, min_axis_blocks):
    """Lane tile for the (N, C, HW) layout: a multiple of 128, or the full extent."""
    itemsize = jnp.dtype(dtype).itemsize
    pack = max(8, 32 // itemsize)                 # sublane rows per native VMEM tile
    c_native = _round_up(c, pack)                 # blocks are stored sublane-padded
    c_f32 = _round_up(c, 8)                       # f32 intermediates pad to 8 rows
    per_lane_block = max(c_native * itemsize, c_f32 * 4)
    # Per lane-column: double-buffered in + out (native) plus ~3 f32 intermediates.
    per_lane_total = 4 * c_native * itemsize + 3 * c_f32 * 4

    lanes = (block_budget // per_lane_block) // 128 * 128
    lanes = max(512, int(lanes))                  # keep >= 2 KiB contiguous DMA runs per row
    # Safety clamp: implied working set must stay inside the scoped-VMEM limit.
    max_lanes = max(128, int((vmem_limit * 3 // 4) // per_lane_total) // 128 * 128)
    lanes = min(lanes, max_lanes)

    tile = hw if hw <= lanes else lanes
    # Best-effort: enough blocks along HW to feed both TensorCores on multi-core parts.
    while tile > 128 and pl.cdiv(hw, tile) < min_axis_blocks:
        tile = max(128, (tile // 2) // 128 * 128)
    return tile


def _pick_tile_s_4d(s, c, dtype, block_budget, vmem_limit, min_axis_blocks):
    """Sublane tile (multiple of 8, or the full extent) for the (N, C, S, 128) layout."""
    itemsize = jnp.dtype(dtype).itemsize
    # Each sublane-row of the (ts, 128) tail exists once per channel; budget in
    # f32-equivalent bytes (covers native block and upcast intermediates).
    per_row_block = c * 128 * max(itemsize, 4)
    per_row_total = 4 * c * 128 * itemsize + 3 * c * 128 * 4

    ts = (block_budget // per_row_block) // 8 * 8
    ts = max(8, int(ts))
    max_ts = max(8, int((vmem_limit * 3 // 4) // per_row_total) // 8 * 8)
    ts = min(ts, max_ts)

    if s <= ts:
        ts = s                                    # full extent is always a legal block dim
    while ts > 8 and pl.cdiv(s, ts) < min_axis_blocks:
        ts = max(8, (ts // 2) // 8 * 8)
    return ts


def chan_norm(x_nchw, g, b, *, eps=1e-5):
    """ChanNorm forward. x_nchw: (N, C, H, W); g, b: (1, C, 1, 1)."""
    N, C, H, W = x_nchw.shape
    HW = H * W
    itemsize = jnp.dtype(x_nchw.dtype).itemsize
    pack = max(8, 32 // itemsize)

    block_budget, vmem_limit, min_total_blocks = _budgets()
    min_axis_blocks = -(-min_total_blocks // max(N, 1))

    kernel = functools.partial(_chan_norm_kernel, eps=eps)
    compiler_params = pltpu.CompilerParams(
        dimension_semantics=("parallel", "parallel"),
        vmem_limit_bytes=vmem_limit,
    )

    # Small / ragged channel count: keep lanes AND sublanes 100% utilized by placing spatial
    # data on both trailing dims; the channel reduction becomes plain VALU adds over axis=1.
    use_4d = (C % pack != 0) and (HW % 128 == 0)

    if use_4d:
        S = HW // 128
        ts = _pick_tile_s_4d(S, C, x_nchw.dtype, block_budget, vmem_limit, min_axis_blocks)
        x4 = x_nchw.reshape(N, C, S, 128)          # free view of NCHW
        g4 = g.reshape(1, C, 1, 1)
        b4 = b.reshape(1, C, 1, 1)
        out = pl.pallas_call(
            kernel,
            out_shape=jax.ShapeDtypeStruct((N, C, S, 128), x_nchw.dtype),
            grid_spec=pltpu.PrefetchScalarGridSpec(
                num_scalar_prefetch=0,
                grid=(N, pl.cdiv(S, ts)),
                in_specs=[
                    pl.BlockSpec((1, C, ts, 128), lambda n, j: (n, 0, j, 0)),
                    pl.BlockSpec((1, C, 1, 1), lambda n, j: (0, 0, 0, 0)),
                    pl.BlockSpec((1, C, 1, 1), lambda n, j: (0, 0, 0, 0)),
                ],
                out_specs=pl.BlockSpec((1, C, ts, 128), lambda n, j: (n, 0, j, 0)),
            ),
            compiler_params=compiler_params,
        )(x4, g4, b4)
        return out.reshape(N, C, H, W)

    # Channels-on-sublanes layout: (N, C, H*W) free view, lane-dense spatial tiles.
    tile_hw = _pick_tile_hw_3d(HW, C, x_nchw.dtype, block_budget, vmem_limit, min_axis_blocks)
    x3 = x_nchw.reshape(N, C, HW)
    g3 = g.reshape(1, C, 1)
    b3 = b.reshape(1, C, 1)
    out = pl.pallas_call(
        kernel,
        out_shape=jax.ShapeDtypeStruct((N, C, HW), x_nchw.dtype),
        grid_spec=pltpu.PrefetchScalarGridSpec(
            num_scalar_prefetch=0,
            grid=(N, pl.cdiv(HW, tile_hw)),
            in_specs=[
                pl.BlockSpec((1, C, tile_hw), lambda n, j: (n, 0, j)),
                pl.BlockSpec((1, C, 1), lambda n, j: (0, 0, 0)),
                pl.BlockSpec((1, C, 1), lambda n, j: (0, 0, 0)),
            ],
            out_specs=pl.BlockSpec((1, C, tile_hw), lambda n, j: (n, 0, j)),
        ),
        compiler_params=compiler_params,
    )(x3, g3, b3)
    return out.reshape(N, C, H, W)


def chan_norm_ref(x, g, b, eps=1e-5):
    mean = jnp.mean(x, axis=1, keepdims=True)
    var = jnp.mean((x - mean) ** 2, axis=1, keepdims=True)   # unbiased=False, like the module
    return (x - mean) / jnp.sqrt(var + eps) * g + b


if __name__ == "__main__":
    key = jax.random.PRNGKey(0)
    kx, kg, kb = jax.random.split(key, 3)

    N, C, H, W = 2, 4, 16, 16
    x = jax.random.normal(kx, (N, C, H, W), dtype=jnp.float32)

    # Learnable params (init is ones/zeros; use non-trivial values to exercise scale/shift).
    g = jnp.ones((1, C, 1, 1), dtype=jnp.float32) + 0.1 * jax.random.normal(kg, (1, C, 1, 1))
    b = jnp.zeros((1, C, 1, 1), dtype=jnp.float32) + 0.1 * jax.random.normal(kb, (1, C, 1, 1))

    out = jax.block_until_ready(chan_norm(x, g, b, eps=1e-5))

    ref = chan_norm_ref(x, g, b, eps=1e-5)
    assert out.shape == (N, C, H, W)
    assert jnp.allclose(out, ref, atol=1e-5, rtol=1e-5)

    print("KERNEL_OK")
</pallas_src>

<mosaic_0001>
module attributes {stable_mosaic.version = 11 : i64} {
  func.func @_chan_norm_kernel(%arg0: i32, %arg1: i32, %arg2: memref<1x4x2x128xf32, #tpu.memory_space<vmem>>, %arg3: memref<1x4x1x1xf32, #tpu.memory_space<vmem>>, %arg4: memref<1x4x1x1xf32, #tpu.memory_space<vmem>>, %arg5: memref<1x4x2x128xf32, #tpu.memory_space<vmem>>) attributes {dimension_semantics = [#tpu.dimension_semantics<parallel>, #tpu.dimension_semantics<parallel>], iteration_bounds = array<i64: 2, 1>, scalar_prefetch = 0 : i64, scratch_operands = 0 : i64, tpu.core_type = #tpu.core_type<tc>, window_params = [{transform_indices = @transform_0, window_bounds = array<i64: 1, 4, 2, 128>}, {pipeline_mode = #tpu.pipeline_mode<synchronous>, transform_indices = @transform_1, window_bounds = array<i64: 1, 4, 1, 1>}, {pipeline_mode = #tpu.pipeline_mode<synchronous>, transform_indices = @transform_2, window_bounds = array<i64: 1, 4, 1, 1>}, {transform_indices = @transform_3, window_bounds = array<i64: 1, 4, 2, 128>}]} {
    %c0 = arith.constant 0 : index
    %c0_0 = arith.constant 0 : index
    %c0_1 = arith.constant 0 : index
    %c0_2 = arith.constant 0 : index
    %0 = vector.load %arg2[%c0, %c0_0, %c0_1, %c0_2] : memref<1x4x2x128xf32, #tpu.memory_space<vmem>>, vector<1x4x2x128xf32>
    %cst = arith.constant dense<0.000000e+00> : vector<1x2x128xf32>
    %1 = vector.multi_reduction <add>, %0, %cst [1] : vector<1x4x2x128xf32> to vector<1x2x128xf32>
    %2 = vector.shape_cast %1 : vector<1x2x128xf32> to vector<1x1x2x128xf32>
    %cst_3 = arith.constant 4.000000e+00 : f32
    %3 = vector.broadcast %cst_3 : f32 to vector<1x1x2x128xf32>
    %4 = arith.divf %2, %3 : vector<1x1x2x128xf32>
    %5 = vector.broadcast %4 : vector<1x1x2x128xf32> to vector<1x4x2x128xf32>
    %6 = arith.subf %0, %5 : vector<1x4x2x128xf32>
    %7 = arith.mulf %6, %6 : vector<1x4x2x128xf32>
    %cst_4 = arith.constant dense<0.000000e+00> : vector<1x2x128xf32>
    %8 = vector.multi_reduction <add>, %7, %cst_4 [1] : vector<1x4x2x128xf32> to vector<1x2x128xf32>
    %9 = vector.shape_cast %8 : vector<1x2x128xf32> to vector<1x1x2x128xf32>
    %cst_5 = arith.constant 4.000000e+00 : f32
    %10 = vector.broadcast %cst_5 : f32 to vector<1x1x2x128xf32>
    %11 = arith.divf %9, %10 : vector<1x1x2x128xf32>
    %cst_6 = arith.constant 9.99999974E-6 : f32
    %12 = vector.broadcast %cst_6 : f32 to vector<1x1x2x128xf32>
    %13 = arith.addf %11, %12 : vector<1x1x2x128xf32>
    %14 = math.rsqrt %13 : vector<1x1x2x128xf32>
    %c0_7 = arith.constant 0 : index
    %c0_8 = arith.constant 0 : index
    %c0_9 = arith.constant 0 : index
    %c0_10 = arith.constant 0 : index
    %15 = vector.load %arg3[%c0_7, %c0_8, %c0_9, %c0_10] : memref<1x4x1x1xf32, #tpu.memory_space<vmem>>, vector<1x4x1x1xf32>
    %c0_11 = arith.constant 0 : index
    %c0_12 = arith.constant 0 : index
    %c0_13 = arith.constant 0 : index
    %c0_14 = arith.constant 0 : index
    %16 = vector.load %arg4[%c0_11, %c0_12, %c0_13, %c0_14] : memref<1x4x1x1xf32, #tpu.memory_space<vmem>>, vector<1x4x1x1xf32>
    %17 = vector.broadcast %14 : vector<1x1x2x128xf32> to vector<1x4x2x128xf32>
    %18 = arith.mulf %6, %17 : vector<1x4x2x128xf32>
    %19 = vector.broadcast %15 : vector<1x4x1x1xf32> to vector<1x4x2x128xf32>
    %20 = arith.mulf %18, %19 : vector<1x4x2x128xf32>
    %21 = vector.broadcast %16 : vector<1x4x1x1xf32> to vector<1x4x2x128xf32>
    %22 = arith.addf %20, %21 : vector<1x4x2x128xf32>
    %c0_15 = arith.constant 0 : index
    %c0_16 = arith.constant 0 : index
    %c0_17 = arith.constant 0 : index
    %c0_18 = arith.constant 0 : index
    %23 = vector.load %arg5[%c0_15, %c0_16, %c0_17, %c0_18] : memref<1x4x2x128xf32, #tpu.memory_space<vmem>>, vector<1x4x2x128xf32>
    tpu.vector_store %arg5[%c0_15, %c0_16, %c0_17, %c0_18], %22 {strides = array<i32>} : memref<1x4x2x128xf32, #tpu.memory_space<vmem>>, vector<1x4x2x128xf32>,
    return
  }
  func.func @transform_0(%arg0: i32, %arg1: i32) -> (i32, i32, i32, i32) {
    %c0_i32 = arith.constant 0 : i32
    %c0_i32_0 = arith.constant 0 : i32
    %c0_i32_1 = arith.constant 0 : i32
    return %arg0, %c0_i32, %arg1, %c0_i32_0 : i32, i32, i32, i32
  }
  func.func @transform_1(%arg0: i32, %arg1: i32) -> (i32, i32, i32, i32) {
    %c0_i32 = arith.constant 0 : i32
    %c0_i32_0 = arith.constant 0 : i32
    %c0_i32_1 = arith.constant 0 : i32
    %c0_i32_2 = arith.constant 0 : i32
    %c0_i32_3 = arith.constant 0 : i32
    return %c0_i32, %c0_i32_0, %c0_i32_1, %c0_i32_2 : i32, i32, i32, i32
  }
  func.func @transform_2(%arg0: i32, %arg1: i32) -> (i32, i32, i32, i32) {
    %c0_i32 = arith.constant 0 : i32
    %c0_i32_0 = arith.constant 0 : i32
    %c0_i32_1 = arith.constant 0 : i32
    %c0_i32_2 = arith.constant 0 : i32
    %c0_i32_3 = arith.constant 0 : i32
    return %c0_i32, %c0_i32_0, %c0_i32_1, %c0_i32_2 : i32, i32, i32, i32
  }
  func.func @transform_3(%arg0: i32, %arg1: i32) -> (i32, i32, i32, i32) {
    %c0_i32 = arith.constant 0 : i32
    %c0_i32_0 = arith.constant 0 : i32
    %c0_i32_1 = arith.constant 0 : i32
    return %arg0, %c0_i32, %arg1, %c0_i32_0 : i32, i32, i32, i32
  }
}

</mosaic_0001>

<bundles_post_ra>
// kernel: tpu_custom_call.1
= control target key start
LH: loop header
LB: loop body
LE: loop exit
PB: predicated region body
PF: predicated region fallthrough
CT: control target
= control target key end

     0   :  { %8 = vsyncpa [#allocation3], 0  ;;  %s849_s0 = inlined_call_operand.hbm [shape: f32[2,4,2,128], index: 0, kind: input, shape index: {}]   ;;  %s850_s1 = inlined_call_operand.vmem [shape: f32[1,4,1,1], index: 1, kind: input, shape index: {}]   ;;  %s851_s2 = inlined_call_operand.vmem [shape: f32[1,4,1,1], index: 2, kind: input, shape index: {}]   ;;  %s852_s3 = inlined_call_operand.hbm [shape: f32[2,4,2,128], index: 3, kind: output, shape index: {}]  }
   0x1   :  { %10 = vsyncpa [#allocation3 + $0x1], 0 }
   0x2   :  { %11 = vsyncpa [#allocation4], 0 }
   0x3   :  { %13 = vsyncpa [#allocation4 + $0x1], 0  ;;  %s667_s12 = smov 0   ;;  %s669_s13 = smov 0  }
   0x4   :  { %s671_s14 = smov 0   ;;  %s673_s15 = smov 0  }
   0x5   :  { %s675_s16 = smov 0   ;;  %s677_s17 = smov 0  }
   0x6 LB: > { %s434_s18 = sadd.s32 4294967295, %s638_s17   ;;  %s435_s19 = sadd.s32 4294967294, %s638_s17   ;;  %s638_s17 = sphi %s677_s17, %s19_s17   ;;  %s634_s16 = sphi %s675_s16, %s863_s16   ;;  %s630_s15 = sphi %s673_s15, %s862_s15   ;;  %s626_s14 = sphi %s671_s14, %s861_s14   ;;  %s622_s13 = sphi %s669_s13, %s860_s13   ;;  %s618_s12 = sphi %s667_s12, %s859_s12  }
   0x7   : > { %s31_s20 = sadd.s32 1, %s634_s16  ;;  %s40_s21 = sadd.s32 1, %s626_s14 }
   0x8   : > { %p33_p0 = scmp.ge.s32.totalorder %s31_s20, 2  ;;  %p47_p1 = scmp.ne.s32.totalorder %s626_s14, %s622_s13 }
   0x9   : > { %p48_p2 = scmp.eq.s32.totalorder %s638_s17, 0  ;;  %p53_p3 = scmp.ne.s32.totalorder %s622_s13, %s618_s12 }
   0xa   : > { %s865_s20 = smov (%p33_p0, %s31_s20), 0  ;;  %p54_p5 = scmp.eq.s32.totalorder %s434_s18, 0 }
   0xb   : > { %p708_p4 = por %p48_p2, %p47_p1  ;;  %s35_s23 = ssub.s32 %s634_s16, %s865_s20 }
   0xc   : > { %p121_p6 = scmp.eq.s32.totalorder %s434_s18, 1  ;;  %p38_p7 = scmp.eq.s32.totalorder %s35_s23, 0 }
   0xd   : > { %p714_p8 = por %p54_p5, %p53_p3  ;;  %p127_p10 = scmp.eq.s32.totalorder %s435_s19, 1 }
   0xe   : > { %p718_p9 = por %p121_p6, %p47_p1  ;;  %p471_p13 = scmp.lt.s32.totalorder %s638_s17, 2 }
   0xf   : > { %s723_s26 = scalar_select %p38_p7, %s626_s14, %s40_s21  }
  0x10   : > { %p725_p11 = por %p127_p10, %p53_p3  ;;  %s153_s28 = sand.u32 1, %s626_s14  }
  0x11   : > { %s438_s29 = sshll.u32 %s153_s28, 3  ;;  %s457_s30 = sshll.u32 %s634_s16, 7 }
  0x12   : > { %s164_s6 = scalar_lea.hbm %s849_s0, %s457_s30  ;;  %s157_s7 = scalar_lea.vmem [#allocation2], %s438_s29 }
  0x13   : > { %s165_s8 = sshll.u32 %s157_s7, 4  ;;  %p738_p0 = pnand %p471_p13, %p708_p4  ;;  %s166_s8 = int_to_ptr.vmem [resolvable:$true] %s165_s8 }
  0x14   : > { %p441_p1 = scmp.ge.s32.totalorder %s638_s17, 1  ;;  %s154_s10 = scalar_lea.sflag [#allocation3], %s153_s28 }
  0x15   : > { %p532_p2 = pneg %p738_p0  ;;  %s543_s11 = scalar_lea.vmem %s166_s8, 128 }
  0x16   : > { %p544_p3 = scmp.ne.s32.totalorder %s166_s8, %s543_s11  ;;  %s640_s18 = smov [#allocation2]  }
  0x17   : > { %s548_s19 = sshll.u32 %s640_s18, 4  ;;  %s549_s19 = int_to_ptr.vmem [resolvable:$false] %s548_s19 }
  0x18   : > { %p546_p5 = pnand %p544_p3, %p532_p2  ;;  %s550_s21 = scalar_lea.vmem %s549_s19, 256 }
  0x19   : > { %p551_p7 = scmp.lt.s32.totalorder %s166_s8, %s549_s19  ;;  %p552_p10 = scmp.lt.s32.totalorder %s550_s21, %s543_s11 }
  0x1a   : > { %p547_p6 = pneg %p546_p5 }
  0x1b   : > { %p553_p12 = por %p552_p10, %p551_p7 }
  0x1d   : > { %p554_p4 = pnand %p553_p12, %p547_p6 }
  0x1f   : > { %557 = shalt.err (!%p554_p4)
}
  0x20   : > { %s641_s22 = smov 32   ;;  %s642_s23 = smov 2  }
  0x21   : > { %466 = dma.hbm_to_vmem [thread:$0]  (!%p738_p0), %s164_s6, 128, %s166_s8, %s154_s10, %s641_s22, %s641_s22, %s642_s23  }
  0x22   : > { %p173_p13 = scmp.lt.s32.totalorder %s638_s17, 3 }
  0x24   : > { %p174_p2 = pnand %p441_p1, %p173_p13 }
  0x25   : > { %s751_s28 = sand.u32 (!%p174_p2), 1, %s622_s13  }
  0x26   : > { %177 = sbr.rel (%p174_p2) target bundleno = 198 (0xc6), region = 32  ;;  %s442_s29 = sshll.u32 (!%p174_p2), %s751_s28, 3 }
  0x27   : > { %s180_s30 = scalar_lea.sflag (!%p174_p2), [#allocation3], %s751_s28  ;;  %s183_s4 = scalar_lea.vmem (!%p174_p2), [#allocation2], %s442_s29 }
  0x2b   : > { %609 = dma.done.wait (%p714_p8), %s180_s30, 128  }
  0x2c   : > { %611 = vsyncadd (%p714_p8), %s180_s30, 4294967168  ;;  %v643_v0 = vmov 0   ;;  %v446_v1 = vld [vmem:[%s850_s1 + $0x2] ss:$0 sm:$0xff]  ;;  %v444_v2 = vld [vmem:[%s850_s1] ss:$0 sm:$0xff] }
  0x2d   : > { %527 = vset.pattern.permute.xlu1 %v643_v0  ;;  %526 = vset.pattern.permute.xlu0 %v643_v0  ;;  %v447_v3 = vld [vmem:[%s850_s1 + $0x3] ss:$0 sm:$0xff]  ;;  %v445_v4 = vld [vmem:[%s850_s1 + $0x1] ss:$0 sm:$0xff]  ;;  %v448_v6 = vld [vmem:[%s851_s2] ss:$0 sm:$0xff] }
  0x2e   : > { %279 = vperm.xlu1 %527, %v446_v1   ;;  %271 = vperm.xlu0 %526, %v444_v2   ;;  %v449_v5 = vld [vmem:[%s851_s2 + $0x1] ss:$0 sm:$0xff]  ;;  %v451_v7 = vld [vmem:[%s851_s2 + $0x3] ss:$0 sm:$0xff]  ;;  %v450_v8 = vld [vmem:[%s851_s2 + $0x2] ss:$0 sm:$0xff] }
  0x2f   : > { %vm210_vm0 = vcmask 1041408   ;;  %v206_v9 = vld [vmem:[%s183_s4] sm:$0x3]  ;;  %v207_v10 = vld [vmem:[%s183_s4 + $0x2] sm:$0x3]  ;;  %s458_s8 = sshll.u32 %s630_s15, 7 }
  0x30   : > { %v211_v11 = vsel %vm210_vm0, %v206_v9, 0.0  ;;  %v212_v12 = vsel %vm210_vm0, %v207_v10, 0.0  ;;  %v208_v13 = vld [vmem:[%s183_s4 + $0x4] sm:$0x3]  ;;  %v209_v16 = vld [vmem:[%s183_s4 + $0x6] sm:$0x3]  ;;  %s801_s10 = scalar_lea.hbm %s852_s3, %s458_s8 }
  0x31   : > { %v213_v14 = vadd.f32 %v212_v12, %v211_v11  ;;  %v214_v15 = vsel %vm210_vm0, %v208_v13, 0.0  ;;  %v216_v18 = vsel %vm210_vm0, %v209_v16, 0.0  ;;  %s205_s4 = scalar_lea.vmem [#allocation5], %s442_s29  ;;  %s335_s15 = scalar_lea.sflag [#allocation4], %s751_s28 }
  0x32   : > { %283 = vperm.xlu1 %527, %v447_v3   ;;  %275 = vperm.xlu0 %526, %v445_v4   ;;  %s349_s7 = sshll.u32 %s205_s4, 4  ;;  %s644_s24 = smov [#allocation5]   ;;  %s796_s7 = int_to_ptr.vmem [resolvable:$true] %s349_s7 }
  0x33   : > { %v215_v17 = vadd.f32 %v214_v15, %v213_v14  ;;  %s558_s11 = scalar_lea.vmem %s796_s7, 128  ;;  %s562_s18 = sshll.u32 %s644_s24, 4  ;;  %s563_s18 = int_to_ptr.vmem [resolvable:$false] %s562_s18 }
  0x34   : > { %p559_p8 = scmp.ne.s32.totalorder %s796_s7, %s558_s11  ;;  %s564_s19 = scalar_lea.vmem %s563_s18, 256 }
  0x35   : > { %v217_v19 = vadd.f32 %v216_v18, %v215_v17  ;;  %p565_p1 = scmp.lt.s32.totalorder %s796_s7, %s563_s18  ;;  %p566_p3 = scmp.lt.s32.totalorder %s564_s19, %s558_s11 }
  0x36   : > { %315 = vperm.xlu1 %527, %v449_v5   ;;  %311 = vperm.xlu0 %526, %v448_v6   ;;  %p560_p12 = pnand %p559_p8, %p718_p9 }
  0x37   : > { %v219_v20 = vmul.f32 0.25, %v217_v19  ;;  %p567_p5 = por %p566_p3, %p565_p1 }
  0x38   : > { %p561_p0 = pneg %p560_p12 }
  0x39   : > { %v220_v21 = vsub.f32 %v206_v9, %v219_v20  ;;  %v221_v22 = vsub.f32 %v207_v10, %v219_v20  ;;  %v222_v23 = vsub.f32 %v208_v13, %v219_v20  ;;  %v223_v26 = vsub.f32 %v209_v16, %v219_v20 }
  0x3a   : > { %323 = vperm.xlu1 %527, %v451_v7   ;;  %319 = vperm.xlu0 %526, %v450_v8   ;;  %p568_p6 = pnand %p567_p5, %p561_p0 }
  0x3b   : > { %v224_v24 = vmul.f32 %v220_v21, %v220_v21  ;;  %v225_v25 = vmul.f32 %v221_v22, %v221_v22  ;;  %v226_v27 = vmul.f32 %v222_v23, %v222_v23  ;;  %v227_v31 = vmul.f32 %v223_v26, %v223_v26 }
  0x3d   : > { %v228_v28 = vsel %vm210_vm0, %v224_v24, 0.0  ;;  %v229_v29 = vsel %vm210_vm0, %v225_v25, 0.0  ;;  %v231_v32 = vsel %vm210_vm0, %v226_v27, 0.0  ;;  %v233_v34 = vsel %vm210_vm0, %v227_v31, 0.0 }
  0x3e   : > { %v230_v30 = vadd.f32 %v229_v29, %v228_v28 }
  0x40   : > { %v232_v33 = vadd.f32 %v231_v32, %v230_v30 }
  0x42   : > { %v234_v35 = vadd.f32 %v233_v34, %v232_v33 }
  0x44   : > { %v235_v36 = vmul.f32 0.25, %v234_v35 }
  0x46   : > { %v236_v37 = vadd.f32 1e-05, %v235_v36 }
  0x48   : > { %528 = vrsqrt.f32 %v236_v37 }
  0x55   : > { %v529_v38 = vpop.eup %528 }
  0x56   : > { %v246_v41 = vmul.f32 %v529_v38, %v220_v21  ;;  %v247_v42 = vmul.f32 %v529_v38, %v221_v22  ;;  %v248_v45 = vmul.f32 %v529_v38, %v222_v23  ;;  %v249_v47 = vmul.f32 %v529_v38, %v223_v26 }
  0xa9   : > { %v280_v39 = vpop.permute.xlu1 %279  ;;  %v272_v40 = vpop.permute.xlu0 %271 }
  0xaa   : > { %v286_v46 = vmul.f32 %v272_v40, %v246_v41  ;;  %v288_v53 = vmul.f32 %v280_v39, %v248_v45 }
  0xad   : > { %v284_v43 = vpop.permute.xlu1 %283  ;;  %v276_v44 = vpop.permute.xlu0 %275 }
  0xae   : > { %v287_v48 = vmul.f32 %v276_v44, %v247_v42  ;;  %v289_v54 = vmul.f32 %v284_v43, %v249_v47 }
  0xb1   : > { %v316_v49 = vpop.permute.xlu1 %315  ;;  %v312_v50 = vpop.permute.xlu0 %311 }
  0xb2   : > { %v327_v51 = vadd.f32 %v316_v49, %v287_v48  ;;  %v326_v52 = vadd.f32 %v312_v50, %v286_v46 }
  0xb4   : > { %331 = vst [vmem:[%s205_s4 + $0x2] sm:$0x3] %v327_v51  ;;  %330 = vst [vmem:[%s205_s4] sm:$0x3] %v326_v52 }
  0xb5   : > { %v324_v55 = vpop.permute.xlu1 %323  ;;  %v320_v56 = vpop.permute.xlu0 %319 }
  0xb6   : > { %v329_v57 = vadd.f32 %v324_v55, %v289_v54  ;;  %v328_v58 = vadd.f32 %v320_v56, %v288_v53 }
  0xb8   : > { %333 = vst [vmem:[%s205_s4 + $0x6] sm:$0x3] %v329_v57  ;;  %332 = vst [vmem:[%s205_s4 + $0x4] sm:$0x3] %v328_v58 }
  0xb9   : > { %571 = shalt.err (!%p568_p6)
}
  0xba   : > { %s572_s21 = scalar_lea.hbm %s801_s10, 128  ;;  %s576_s30 = scalar_lea.hbm %s852_s3, 256 }
  0xbb   : > { %p573_p7 = scmp.ne.s32.totalorder %s801_s10, %s572_s21  ;;  %p577_p13 = scmp.lt.s32.totalorder %s801_s10, %s852_s3 }
  0xbc   : > { %p578_p2 = scmp.lt.s32.totalorder %s576_s30, %s572_s21 }
  0xbd   : > { %p574_p10 = pnand %p573_p7, %p718_p9 }
  0xbe   : > { %p579_p8 = por %p578_p2, %p577_p13 }
  0xbf   : > { %p575_p4 = pneg %p574_p10 }
  0xc1   : > { %p580_p12 = pnand %p579_p8, %p575_p4 }
  0xc3   : > { %583 = shalt.err (!%p580_p12)
}
  0xc4   : > { %s645_s4 = smov 32   ;;  %s646_s8 = smov 2  }
  0xc5   : > { %461 = dma.vmem_to_hbm [thread:$0]  (%p718_p9), %s796_s7, 128, %s801_s10, %s335_s15, %s645_s4, %s645_s4, %s646_s8  }
  0xc6 PF: > { %s364_s29 = sand.u32 1, %s618_s12   ;;  %p858_p0 = scmp.ge.s32.totalorder %s638_s17, 2 }
  0xc7   : > { %s365_s9 = scalar_lea.sflag [#allocation4], %s364_s29 }
  0xc8   : > { %p468_p1 = pnand %p858_p0, %p725_p11 }
  0xca   : > { %p469_p3 = pneg %p468_p1 }
  0xcc   : > { %613 = dma.done.wait (%p469_p3), %s365_s9, 128  }
  0xcd   : > { %615 = vsyncadd (%p469_p3), %s365_s9, 4294967168  ;;  %s19_s17 = sadd.s32 1, %s638_s17   ;;  %s859_s12 = smov %s622_s13 }
  0xce   : > { %p16_p5 = scmp.ge.s32.totalorder %s19_s17, 4   ;;  %s860_s13 = smov %s626_s14 }
  0xcf   : > { %s861_s14 = smov %s723_s26  ;;  %s862_s15 = smov %s634_s16 }
  0xd0   : > { %s863_s16 = smov %s865_s20  ;;  %18 = sbr.rel (!%p16_p5) target bundleno = 6 (0x6), region = 77 }
  0xd5   :  { %370 = vsyncpa [#allocation3], 1 }
  0xd6   :  { %372 = vsyncpa [#allocation3 + $0x1], 1 }
  0xd7   :  { %373 = vsyncpa [#allocation4], 1 }
  0xd8   :  { %375 = vsyncpa [#allocation4 + $0x1], 1 }

</bundles_post_ra>
